<compile_context>
chip_gen: v5e
topology: v5e:2x2
jax: 0.10.0
libtpu: 0.0.40
codegen_flags: <defaults>
</compile_context>

<pallas_src>
import jax
import jax.numpy as jnp
import numpy as np
from jax.experimental import pallas as pl
from jax.experimental.pallas import tpu as pltpu


def _edge_enhance_kernel(src_ref, w_ref, b_ref, out_ref):
    # src_ref: (B, J, E)  full src (one instance)
    # w_ref:   (E, E)     nn.Linear weight, (out_features, in_features)
    # b_ref:   (1, E)     nn.Linear bias
    # out_ref: (J, J, E)  full pairwise-relation output (one instance)
    B, J, E = src_ref.shape

    # Batch reduce: skip it entirely for the B == 1 case (static check).
    if B == 1:
        s = src_ref[0].astype(jnp.float32)                            # (J, E)
    else:
        s = jnp.sum(src_ref[...].astype(jnp.float32), axis=0)         # (J, E)

    # Single MXU pass: t = s @ W^T  (contract in_features of both operands).
    t = jax.lax.dot_general(
        s, w_ref[...].astype(jnp.float32),
        dimension_numbers=(((1,), (1,)), ((), ())),
        preferred_element_type=jnp.float32)                           # (J, E)

    tb = t + b_ref[...]                                               # bias folded once

    # out[i, j, :] = t[j] - t[i] + bias.
    # Chunk the i axis in groups of 8: one fused broadcast-subtract + one bulk
    # store per chunk (3 stores total) instead of 22 per-row masked stores,
    # while keeping <= 24 live (8,128) vregs per chunk (no spills).
    CH = 8
    for i0 in range(0, J, CH):
        rows = min(CH, J - i0)
        blk = tb[None, :, :] - t[i0:i0 + rows, :][:, None, :]         # (rows, J, E)
        out_ref[pl.ds(i0, rows)] = blk.astype(out_ref.dtype)


def spatial_edge_enhance(src, weight, bias):
    """Single instance. src: (B, J, E) f32; weight: (E, E) (out, in); bias: (E,).

    Returns (J, J, E) f32.
    """
    B, J, E = src.shape
    b2 = bias.reshape(1, E)
    cost = pl.CostEstimate(
        flops=2 * J * E * E + 3 * J * J * E,
        bytes_accessed=4 * (B * J * E + E * E + E + J * J * E),
        transcendentals=0)
    return pl.pallas_call(
        _edge_enhance_kernel,
        out_shape=jax.ShapeDtypeStruct((J, J, E), jnp.float32),
        # Single invocation (no grid): every operand is a full block resident in VMEM.
        in_specs=[
            pl.BlockSpec(memory_space=pltpu.MemorySpace.VMEM),   # src  (B, J, E)
            pl.BlockSpec(memory_space=pltpu.MemorySpace.VMEM),   # W    (E, E)
            pl.BlockSpec(memory_space=pltpu.MemorySpace.VMEM),   # bias (1, E)
        ],
        out_specs=pl.BlockSpec(memory_space=pltpu.MemorySpace.VMEM),
        cost_estimate=cost,
    )(src, weight, b2)


def spatial_edge_enhance_batched(src_n, weight, bias):
    """N independent module invocations fused into one pallas_call.

    src_n: (N, B, J, E) f32; weight: (E, E); bias: (E,). Returns (N, J, J, E) f32.
    The leading grid axis is marked "parallel" so v7x's two TensorCores split the
    instances; per-instance src/out DMAs are double-buffered by the BlockSpecs.
    """
    N, B, J, E = src_n.shape
    b2 = bias.reshape(1, E)
    cost = pl.CostEstimate(
        flops=N * (2 * J * E * E + 3 * J * J * E),
        bytes_accessed=4 * (N * B * J * E + E * E + E + N * J * J * E),
        transcendentals=0)
    return pl.pallas_call(
        _edge_enhance_kernel,
        out_shape=jax.ShapeDtypeStruct((N, J, J, E), jnp.float32),
        grid=(N,),
        in_specs=[
            # Leading instance dim is squeezed (None) so the kernel body is shared
            # with the single-instance entry point.
            pl.BlockSpec((None, B, J, E), lambda n: (n, 0, 0, 0)),   # src_n
            pl.BlockSpec((E, E), lambda n: (0, 0)),                  # W (resident)
            pl.BlockSpec((1, E), lambda n: (0, 0)),                  # bias (resident)
        ],
        out_specs=pl.BlockSpec((None, J, J, E), lambda n: (n, 0, 0, 0)),
        compiler_params=pltpu.CompilerParams(dimension_semantics=("parallel",)),
        cost_estimate=cost,
    )(src_n, weight, b2)


def reference(src, weight, bias):
    # Pure-JAX reference with the same interpretation of the PyTorch module.
    s = jnp.sum(src.astype(jnp.float32), axis=0)           # (J, E)
    rel = s[None, :, :] - s[:, None, :]                     # rel[i, j] = s[j] - s[i]
    return jnp.einsum("ije,oe->ijo", rel, weight) + bias


if __name__ == "__main__":
    joints, frames, embedding_dim, batch = 22, 10, 32, 1  # frames/T_SPD unused by the spatial module

    key = jax.random.PRNGKey(0)
    k_src, k_w, k_b, k_srcn = jax.random.split(key, 4)
    src = jax.random.normal(k_src, (batch, joints, embedding_dim), dtype=jnp.float32)
    # Deterministic synthetic nn.Linear parameters (weight: (out, in), bias: (out,))
    weight = jax.random.normal(k_w, (embedding_dim, embedding_dim), dtype=jnp.float32) / jnp.sqrt(
        jnp.float32(embedding_dim))
    bias = 0.1 * jax.random.normal(k_b, (embedding_dim,), dtype=jnp.float32)

    # Single-instance path.
    out = jax.block_until_ready(spatial_edge_enhance(src, weight, bias))
    ref = reference(src, weight, bias)
    assert out.shape == (joints, joints, embedding_dim)
    np.testing.assert_allclose(np.asarray(out), np.asarray(ref), rtol=1e-4, atol=1e-4)

    # Multi-instance path: fold several module invocations into one pallas_call.
    n_inst = 4
    src_n = jax.random.normal(
        k_srcn, (n_inst, batch, joints, embedding_dim), dtype=jnp.float32)
    out_n = jax.block_until_ready(spatial_edge_enhance_batched(src_n, weight, bias))
    ref_n = jnp.stack([reference(src_n[i], weight, bias) for i in range(n_inst)])
    assert out_n.shape == (n_inst, joints, joints, embedding_dim)
    np.testing.assert_allclose(np.asarray(out_n), np.asarray(ref_n), rtol=1e-4, atol=1e-4)

    print("KERNEL_OK")
</pallas_src>

<mosaic_0001>
module attributes {stable_mosaic.version = 11 : i64} {
  func.func @_edge_enhance_kernel(%arg0: memref<1x22x32xf32, #tpu.memory_space<vmem>>, %arg1: memref<32x32xf32, #tpu.memory_space<vmem>>, %arg2: memref<1x32xf32, #tpu.memory_space<vmem>>, %arg3: memref<22x22x32xf32, #tpu.memory_space<vmem>>) attributes {dimension_semantics = [], scalar_prefetch = 0 : i64, scratch_operands = 0 : i64, tpu.core_type = #tpu.core_type<tc>} {
    %c0 = arith.constant 0 : index
    %c0_0 = arith.constant 0 : index
    %c0_1 = arith.constant 0 : index
    %0 = vector.load %arg0[%c0, %c0_0, %c0_1] : memref<1x22x32xf32, #tpu.memory_space<vmem>>, vector<1x22x32xf32>
    %1 = vector.shape_cast %0 : vector<1x22x32xf32> to vector<22x32xf32>
    %c0_2 = arith.constant 0 : index
    %c0_3 = arith.constant 0 : index
    %2 = vector.load %arg1[%c0_2, %c0_3] : memref<32x32xf32, #tpu.memory_space<vmem>>, vector<32x32xf32>
    %cst = arith.constant dense<0.000000e+00> : vector<22x32xf32>
    %3 = tpu.matmul %1, %2, %cst {dimension_numbers = #tpu.dot_dimension_numbers<[1], [1], [0], [0], [0, 0, 1, 0], [], []>} : vector<22x32xf32>, vector<32x32xf32>, vector<22x32xf32> -> vector<22x32xf32>
    %c0_4 = arith.constant 0 : index
    %c0_5 = arith.constant 0 : index
    %4 = vector.load %arg2[%c0_4, %c0_5] : memref<1x32xf32, #tpu.memory_space<vmem>>, vector<1x32xf32>
    %5 = vector.broadcast %4 : vector<1x32xf32> to vector<22x32xf32>
    %6 = arith.addf %3, %5 : vector<22x32xf32>
    %7 = vector.shape_cast %6 : vector<22x32xf32> to vector<1x22x32xf32>
    %8 = vector.extract_strided_slice %3 {offsets = [0, 0], sizes = [8, 32], strides = [1, 1]} : vector<22x32xf32> to vector<8x32xf32>
    %9 = vector.shape_cast %8 : vector<8x32xf32> to vector<8x1x32xf32>
    %10 = vector.broadcast %7 : vector<1x22x32xf32> to vector<8x22x32xf32>
    %11 = vector.broadcast %9 : vector<8x1x32xf32> to vector<8x22x32xf32>
    %12 = arith.subf %10, %11 : vector<8x22x32xf32>
    %c0_6 = arith.constant 0 : index
    %c0_7 = arith.constant 0 : index
    %c0_8 = arith.constant 0 : index
    %13 = vector.load %arg3[%c0_6, %c0_7, %c0_8] : memref<22x22x32xf32, #tpu.memory_space<vmem>>, vector<8x22x32xf32>
    tpu.vector_store %arg3[%c0_6, %c0_7, %c0_8], %12 {strides = array<i32>} : memref<22x22x32xf32, #tpu.memory_space<vmem>>, vector<8x22x32xf32>,
    %14 = vector.shape_cast %6 : vector<22x32xf32> to vector<1x22x32xf32>
    %15 = vector.extract_strided_slice %3 {offsets = [8, 0], sizes = [8, 32], strides = [1, 1]} : vector<22x32xf32> to vector<8x32xf32>
    %16 = vector.shape_cast %15 : vector<8x32xf32> to vector<8x1x32xf32>
    %17 = vector.broadcast %14 : vector<1x22x32xf32> to vector<8x22x32xf32>
    %18 = vector.broadcast %16 : vector<8x1x32xf32> to vector<8x22x32xf32>
    %19 = arith.subf %17, %18 : vector<8x22x32xf32>
    %c8 = arith.constant 8 : index
    %c0_9 = arith.constant 0 : index
    %c0_10 = arith.constant 0 : index
    %20 = vector.load %arg3[%c8, %c0_9, %c0_10] : memref<22x22x32xf32, #tpu.memory_space<vmem>>, vector<8x22x32xf32>
    tpu.vector_store %arg3[%c8, %c0_9, %c0_10], %19 {strides = array<i32>} : memref<22x22x32xf32, #tpu.memory_space<vmem>>, vector<8x22x32xf32>,
    %21 = vector.shape_cast %6 : vector<22x32xf32> to vector<1x22x32xf32>
    %22 = vector.extract_strided_slice %3 {offsets = [16, 0], sizes = [6, 32], strides = [1, 1]} : vector<22x32xf32> to vector<6x32xf32>
    %23 = vector.shape_cast %22 : vector<6x32xf32> to vector<6x1x32xf32>
    %24 = vector.broadcast %21 : vector<1x22x32xf32> to vector<6x22x32xf32>
    %25 = vector.broadcast %23 : vector<6x1x32xf32> to vector<6x22x32xf32>
    %26 = arith.subf %24, %25 : vector<6x22x32xf32>
    %c16 = arith.constant 16 : index
    %c0_11 = arith.constant 0 : index
    %c0_12 = arith.constant 0 : index
    %27 = vector.load %arg3[%c16, %c0_11, %c0_12] : memref<22x22x32xf32, #tpu.memory_space<vmem>>, vector<6x22x32xf32>
    tpu.vector_store %arg3[%c16, %c0_11, %c0_12], %26 {strides = array<i32>} : memref<22x22x32xf32, #tpu.memory_space<vmem>>, vector<6x22x32xf32>,
    return
  }
}

</mosaic_0001>

<bundles_post_ra>
// kernel: tpu_custom_call.1
= control target key start
LH: loop header
LB: loop body
LE: loop exit
PB: predicated region body
PF: predicated region fallthrough
CT: control target
= control target key end

     0   :  { %vm22_vm0 = vcmask 261120   ;;  %s564_s0 = inlined_call_operand.vmem [shape: f32[1,22,32], index: 0, kind: input, shape index: {}]   ;;  %s565_s1 = inlined_call_operand.vmem [shape: f32[32,32], index: 1, kind: input, shape index: {}]   ;;  %s566_s2 = inlined_call_operand.vmem [shape: f32[1,32], index: 2, kind: input, shape index: {}]   ;;  %s567_s3 = inlined_call_operand.hbm [shape: f32[22,22,32], index: 3, kind: output, shape index: {}]  }
   0x1   :  { %v21_v0 = vld [vmem:[%s565_s1 + $0x18] sm:$0xff]  ;;  %v20_v1 = vld [vmem:[%s565_s1 + $0x10] sm:$0xff] }
   0x2   :  { %304 = vmatpush.xpose.msk.msra.mxu2 %vm22_vm0, %v21_v0  ;;  %296 = vmatpush.xpose.msk.msra.mxu0 %vm22_vm0, %v21_v0 }
   0x3   :  { %303 = vmatpush.xpose.msk.msra.mxu1 %vm22_vm0, %v21_v0 }
   0x4   :  { %8 = vsyncpa [#allocation3], 0  ;;  %v19_v2 = vld [vmem:[%s565_s1 + $0x8] sm:$0xff]  ;;  %v18_v3 = vld [vmem:[%s565_s1] sm:$0xff]  ;;  %vm127_vm1 = vcmask 259072   ;;  %s284_s29 = sshll.u32 %s567_s3, 4  ;;  %s285_s29 = int_to_ptr.hbm [resolvable:$true] %s284_s29 }
   0x5   :  { %v17_v4 = vld [vmem:[%s564_s0 + $0x10] sm:$0x3f]  ;;  %v15_v5 = vld [vmem:[%s564_s0] sm:$0xff]  ;;  %v16_v6 = vld [vmem:[%s564_s0 + $0x8] sm:$0xff]  ;;  %s341_s0 = smov [#allocation2]   ;;  %s342_s30 = smov 128  }
   0x6   :  { %306 = vmatpush.xpose.msk.msra.mxu2 %vm22_vm0, %v20_v1  ;;  %297 = vmatpush.xpose.msk.msra.mxu0 %vm22_vm0, %v20_v1  ;;  %v314_v9 = vld [vmem:[%s566_s2] ss:$0 sm:$0xff]  ;;  %s282_s2 = sshll.u32 %s341_s0, 4  ;;  %s343_s3 = smov 8   ;;  %s283_s2 = int_to_ptr.vmem [resolvable:$true] %s282_s2 }
   0x7   :  { %305 = vmatpush.xpose.msk.msra.mxu1 %vm22_vm0, %v20_v1 }
   0xa   :  { %308 = vmatpush.xpose.msk.msra.mxu2 %vm22_vm0, %v19_v2  ;;  %298 = vmatpush.xpose.msk.msra.mxu0 %vm22_vm0, %v19_v2 }
   0xb   :  { %307 = vmatpush.xpose.msk.msra.mxu1 %vm22_vm0, %v19_v2 }
   0xe   :  { %310 = vmatpush.xpose.msk.msra.mxu2 %vm22_vm0, %v18_v3  ;;  %299 = vmatpush.xpose.msk.msra.mxu0 %vm22_vm0, %v18_v3 }
   0xf   :  { %309 = vmatpush.xpose.msk.msra.mxu1 %vm22_vm0, %v18_v3 }
  0x11   :  { %302 = vmatmul.msk.f32.vlgmr.msra.gmra.mxu2 %vm22_vm0, %v17_v4  ;;  %300 = vmatmul.msk.f32.vlgmr.msra.gmra.mxu0 %vm22_vm0, %v15_v5 }
  0x12   :  { %301 = vmatmul.msk.f32.vlgmr.msra.gmra.mxu1 %vm22_vm0, %v16_v6 }
  0x8e   :  { %v61_v7 = vpop.f32.mrf.mxu0 }
  0x8f   :  { %v78_v8 = vrot.slane %v61_v7, 1  ;;  %v79_v10 = vrot.slane %v61_v7, 2  ;;  %v85_v11 = vperm.slane %v61_v7, 0  ;;  %v405_v14 = vpop.f32.mrf.mxu1  ;;  %v407_v15 = vadd.f32 %v314_v9, %v61_v7 }
  0x90   :  { %v410_v16 = vadd.f32 %v314_v9, %v405_v14  ;;  %v80_v17 = vrot.slane %v61_v7, 3  ;;  %v81_v24 = vrot.slane %v61_v7, 4  ;;  %v82_v29 = vrot.slane %v61_v7, 5 }
  0x91   :  { %v86_v13 = vperm.slane %v78_v8, 0  ;;  %v87_v19 = vperm.slane %v79_v10, 0  ;;  %v101_v20 = vsub.f32 %v407_v15, %v85_v11  ;;  %v83_v34 = vrot.slane %v61_v7, 6 }
  0x92   :  { %v102_v21 = vsub.f32 %v410_v16, %v85_v11  ;;  %v88_v26 = vperm.slane %v80_v17, 0  ;;  %v89_v31 = vperm.slane %v81_v24, 0  ;;  %v90_v36 = vperm.slane %v82_v29, 0 }
  0x93   :  { %v104_v23 = vsub.f32 %v407_v15, %v86_v13  ;;  %v105_v25 = vsub.f32 %v410_v16, %v86_v13  ;;  %125 = vst.msk [vmem:[#allocation2] sm:$0xff] %vm22_vm0, %v101_v20  ;;  %v107_v28 = vsub.f32 %v407_v15, %v87_v19  ;;  %v108_v30 = vsub.f32 %v410_v16, %v87_v19 }
  0x94   :  { %v403_v12 = vpop.f32.mrf.mxu2  ;;  %126 = vst.msk [vmem:[#allocation2 + $0x8] sm:$0xff] %vm22_vm0, %v102_v21  ;;  %v110_v33 = vsub.f32 %v407_v15, %v88_v26  ;;  %v111_v35 = vsub.f32 %v410_v16, %v88_v26  ;;  %v113_v38 = vsub.f32 %v407_v15, %v89_v31  ;;  %v84_v39 = vrot.slane %v61_v7, 7 }
  0x95   :  { %v413_v18 = vadd.f32 %v314_v9, %v403_v12  ;;  %129 = vst.msk [vmem:[#allocation2 + $0x18] sm:$0xff] %vm22_vm0, %v104_v23  ;;  %v114_v40 = vsub.f32 %v410_v16, %v89_v31  ;;  %v91_v41 = vperm.slane %v83_v34, 0  ;;  %v116_v43 = vsub.f32 %v407_v15, %v90_v36 }
  0x96   :  { %130 = vst.msk [vmem:[#allocation2 + $0x20] sm:$0xff] %vm22_vm0, %v105_v25  ;;  %v117_v44 = vsub.f32 %v410_v16, %v90_v36  ;;  %v92_v45 = vperm.slane %v84_v39, 0  ;;  %v151_v48 = vrot.slane %v405_v14, 1  ;;  %v158_v50 = vperm.slane %v405_v14, 0 }
  0x97   :  { %v103_v22 = vsub.f32 %v413_v18, %v85_v11  ;;  %v106_v27 = vsub.f32 %v413_v18, %v86_v13  ;;  %v109_v32 = vsub.f32 %v413_v18, %v87_v19  ;;  %132 = vst.msk [vmem:[#allocation2 + $0x30] sm:$0xff] %vm22_vm0, %v107_v28  ;;  %v112_v37 = vsub.f32 %v413_v18, %v88_v26 }
  0x98   :  { %133 = vst.msk [vmem:[#allocation2 + $0x38] sm:$0xff] %vm22_vm0, %v108_v30  ;;  %v115_v42 = vsub.f32 %v413_v18, %v89_v31  ;;  %v118_v46 = vsub.f32 %v413_v18, %v90_v36  ;;  %v119_v47 = vsub.f32 %v407_v15, %v91_v41  ;;  %v120_v49 = vsub.f32 %v410_v16, %v91_v41 }
  0x99   :  { %128 = vst.msk [vmem:[#allocation2 + $0x10] sm:$0x3f] %vm127_vm1, %v103_v22  ;;  %v121_v51 = vsub.f32 %v413_v18, %v91_v41  ;;  %v122_v52 = vsub.f32 %v407_v15, %v92_v45  ;;  %v152_v53 = vrot.slane %v405_v14, 2  ;;  %v123_v54 = vsub.f32 %v410_v16, %v92_v45 }
  0x9a   :  { %131 = vst.msk [vmem:[#allocation2 + $0x28] sm:$0x3f] %vm127_vm1, %v106_v27  ;;  %v159_v55 = vperm.slane %v151_v48, 0  ;;  %v124_v56 = vsub.f32 %v413_v18, %v92_v45  ;;  %v174_v57 = vsub.f32 %v407_v15, %v158_v50  ;;  %v153_v58 = vrot.slane %v405_v14, 3 }
  0x9b   :  { %134 = vst.msk [vmem:[#allocation2 + $0x40] sm:$0x3f] %vm127_vm1, %v109_v32  ;;  %v175_v59 = vsub.f32 %v410_v16, %v158_v50  ;;  %v160_v60 = vperm.slane %v152_v53, 0  ;;  %v176_v61 = vsub.f32 %v413_v18, %v158_v50  ;;  %v154_v63 = vrot.slane %v405_v14, 4 }
  0x9c   :  { %135 = vst.msk [vmem:[#allocation2 + $0x48] sm:$0xff] %vm22_vm0, %v110_v33  ;;  %v177_v62 = vsub.f32 %v407_v15, %v159_v55  ;;  %v178_v0 = vsub.f32 %v410_v16, %v159_v55  ;;  %v161_v1 = vperm.slane %v153_v58, 0  ;;  %v179_v2 = vsub.f32 %v413_v18, %v159_v55 }
  0x9d   :  { %136 = vst.msk [vmem:[#allocation2 + $0x50] sm:$0xff] %vm22_vm0, %v111_v35  ;;  %v180_v3 = vsub.f32 %v407_v15, %v160_v60  ;;  %v155_v4 = vrot.slane %v405_v14, 5  ;;  %v181_v5 = vsub.f32 %v410_v16, %v160_v60  ;;  %v162_v6 = vperm.slane %v154_v63, 0 }
  0x9e   :  { %137 = vst.msk [vmem:[#allocation2 + $0x58] sm:$0x3f] %vm127_vm1, %v112_v37  ;;  %v182_v7 = vsub.f32 %v413_v18, %v160_v60  ;;  %v183_v8 = vsub.f32 %v407_v15, %v161_v1  ;;  %v156_v9 = vrot.slane %v405_v14, 6  ;;  %v184_v10 = vsub.f32 %v410_v16, %v161_v1 }
  0x9f   :  { %138 = vst.msk [vmem:[#allocation2 + $0x60] sm:$0xff] %vm22_vm0, %v113_v38  ;;  %v163_v11 = vperm.slane %v155_v4, 0  ;;  %v185_v13 = vsub.f32 %v413_v18, %v161_v1  ;;  %v186_v17 = vsub.f32 %v407_v15, %v162_v6  ;;  %v157_v19 = vrot.slane %v405_v14, 7 }
  0xa0   :  { %139 = vst.msk [vmem:[#allocation2 + $0x68] sm:$0xff] %vm22_vm0, %v114_v40  ;;  %v187_v20 = vsub.f32 %v410_v16, %v162_v6  ;;  %v164_v21 = vperm.slane %v156_v9, 0  ;;  %v188_v22 = vsub.f32 %v413_v18, %v162_v6  ;;  %v224_v28 = vrot.slane %v403_v12, 1 }
  0xa1   :  { %140 = vst.msk [vmem:[#allocation2 + $0x70] sm:$0x3f] %vm127_vm1, %v115_v42  ;;  %v189_v23 = vsub.f32 %v407_v15, %v163_v11  ;;  %v190_v24 = vsub.f32 %v410_v16, %v163_v11  ;;  %v165_v25 = vperm.slane %v157_v19, 0  ;;  %v191_v14 = vsub.f32 %v413_v18, %v163_v11 }
  0xa2   :  { %141 = vst.msk [vmem:[#allocation2 + $0x78] sm:$0xff] %vm22_vm0, %v116_v43  ;;  %v192_v26 = vsub.f32 %v407_v15, %v164_v21  ;;  %v193_v27 = vsub.f32 %v410_v16, %v164_v21  ;;  %v194_v29 = vsub.f32 %v413_v18, %v164_v21  ;;  %v229_v30 = vperm.slane %v403_v12, 0 }
  0xa3   :  { %142 = vst.msk [vmem:[#allocation2 + $0x80] sm:$0xff] %vm22_vm0, %v117_v44  ;;  %v195_v31 = vsub.f32 %v407_v15, %v165_v25  ;;  %v196_v32 = vsub.f32 %v410_v16, %v165_v25  ;;  %v225_v33 = vrot.slane %v403_v12, 2  ;;  %v197_v34 = vsub.f32 %v413_v18, %v165_v25 }
  0xa4   :  { %143 = vst.msk [vmem:[#allocation2 + $0x88] sm:$0x3f] %vm127_vm1, %v118_v46  ;;  %v230_v35 = vperm.slane %v224_v28, 0  ;;  %v241_v36 = vsub.f32 %v407_v15, %v229_v30  ;;  %v226_v37 = vrot.slane %v403_v12, 3  ;;  %v242_v38 = vsub.f32 %v410_v16, %v229_v30 }
  0xa5   :  { %144 = vst.msk [vmem:[#allocation2 + $0x90] sm:$0xff] %vm22_vm0, %v119_v47  ;;  %v231_v39 = vperm.slane %v225_v33, 0  ;;  %v243_v40 = vsub.f32 %v413_v18, %v229_v30  ;;  %v227_v42 = vrot.slane %v403_v12, 4  ;;  %v228_v47 = vrot.slane %v403_v12, 5 }
  0xa6   :  { %145 = vst.msk [vmem:[#allocation2 + $0x98] sm:$0xff] %vm22_vm0, %v120_v49  ;;  %v244_v41 = vsub.f32 %v407_v15, %v230_v35  ;;  %v245_v43 = vsub.f32 %v410_v16, %v230_v35  ;;  %v232_v44 = vperm.slane %v226_v37, 0  ;;  %v246_v45 = vsub.f32 %v413_v18, %v230_v35 }
  0xa7   :  { %146 = vst.msk [vmem:[#allocation2 + $0xa0] sm:$0x3f] %vm127_vm1, %v121_v51  ;;  %v247_v46 = vsub.f32 %v407_v15, %v231_v39  ;;  %v248_v48 = vsub.f32 %v410_v16, %v231_v39  ;;  %v233_v49 = vperm.slane %v227_v42, 0  ;;  %v249_v50 = vsub.f32 %v413_v18, %v231_v39 }
  0xa8   :  { %147 = vst.msk [vmem:[#allocation2 + $0xa8] sm:$0xff] %vm22_vm0, %v122_v52  ;;  %v250_v51 = vsub.f32 %v407_v15, %v232_v44  ;;  %v251_v52 = vsub.f32 %v410_v16, %v232_v44  ;;  %v234_v53 = vperm.slane %v228_v47, 0  ;;  %v252_v12 = vsub.f32 %v413_v18, %v232_v44 }
  0xa9   :  { %148 = vst.msk [vmem:[#allocation2 + $0xb0] sm:$0xff] %vm22_vm0, %v123_v54  ;;  %v253_v54 = vsub.f32 %v407_v15, %v233_v49  ;;  %v254_v55 = vsub.f32 %v410_v16, %v233_v49 }
  0xaa   :  { %149 = vst.msk [vmem:[#allocation2 + $0xb8] sm:$0x3f] %vm127_vm1, %v124_v56  ;;  %v255_v56 = vsub.f32 %v413_v18, %v233_v49  ;;  %v257_v58 = vsub.f32 %v410_v16, %v234_v53 }
  0xab   :  { %199 = vst.msk [vmem:[#allocation2 + $0xc0] sm:$0xff] %vm22_vm0, %v174_v57  ;;  %v256_v57 = vsub.f32 %v407_v15, %v234_v53 }
  0xac   :  { %200 = vst.msk [vmem:[#allocation2 + $0xc8] sm:$0xff] %vm22_vm0, %v175_v59  ;;  %v258_v59 = vsub.f32 %v413_v18, %v234_v53 }
  0xad   :  { %201 = vst.msk [vmem:[#allocation2 + $0xd0] sm:$0x3f] %vm127_vm1, %v176_v61 }
  0xae   :  { %202 = vst.msk [vmem:[#allocation2 + $0xd8] sm:$0xff] %vm22_vm0, %v177_v62 }
  0xaf   :  { %203 = vst.msk [vmem:[#allocation2 + $0xe0] sm:$0xff] %vm22_vm0, %v178_v0 }
  0xb0   :  { %204 = vst.msk [vmem:[#allocation2 + $0xe8] sm:$0x3f] %vm127_vm1, %v179_v2 }
  0xb1   :  { %205 = vst.msk [vmem:[#allocation2 + $0xf0] sm:$0xff] %vm22_vm0, %v180_v3 }
  0xb2   :  { %206 = vst.msk [vmem:[#allocation2 + $0xf8] sm:$0xff] %vm22_vm0, %v181_v5 }
  0xb3   :  { %207 = vst.msk [vmem:[#allocation2 + $0x100] sm:$0x3f] %vm127_vm1, %v182_v7 }
  0xb4   :  { %208 = vst.msk [vmem:[#allocation2 + $0x108] sm:$0xff] %vm22_vm0, %v183_v8 }
  0xb5   :  { %209 = vst.msk [vmem:[#allocation2 + $0x110] sm:$0xff] %vm22_vm0, %v184_v10 }
  0xb6   :  { %210 = vst.msk [vmem:[#allocation2 + $0x118] sm:$0x3f] %vm127_vm1, %v185_v13 }
  0xb7   :  { %211 = vst.msk [vmem:[#allocation2 + $0x120] sm:$0xff] %vm22_vm0, %v186_v17 }
  0xb8   :  { %212 = vst.msk [vmem:[#allocation2 + $0x128] sm:$0xff] %vm22_vm0, %v187_v20 }
  0xb9   :  { %213 = vst.msk [vmem:[#allocation2 + $0x130] sm:$0x3f] %vm127_vm1, %v188_v22 }
  0xba   :  { %214 = vst.msk [vmem:[#allocation2 + $0x138] sm:$0xff] %vm22_vm0, %v189_v23 }
  0xbb   :  { %215 = vst.msk [vmem:[#allocation2 + $0x140] sm:$0xff] %vm22_vm0, %v190_v24 }
  0xbc   :  { %216 = vst.msk [vmem:[#allocation2 + $0x148] sm:$0x3f] %vm127_vm1, %v191_v14 }
  0xbd   :  { %217 = vst.msk [vmem:[#allocation2 + $0x150] sm:$0xff] %vm22_vm0, %v192_v26 }
  0xbe   :  { %218 = vst.msk [vmem:[#allocation2 + $0x158] sm:$0xff] %vm22_vm0, %v193_v27 }
  0xbf   :  { %219 = vst.msk [vmem:[#allocation2 + $0x160] sm:$0x3f] %vm127_vm1, %v194_v29 }
  0xc0   :  { %220 = vst.msk [vmem:[#allocation2 + $0x168] sm:$0xff] %vm22_vm0, %v195_v31 }
  0xc1   :  { %221 = vst.msk [vmem:[#allocation2 + $0x170] sm:$0xff] %vm22_vm0, %v196_v32 }
  0xc2   :  { %222 = vst.msk [vmem:[#allocation2 + $0x178] sm:$0x3f] %vm127_vm1, %v197_v34 }
  0xc3   :  { %260 = vst.msk [vmem:[#allocation2 + $0x180] sm:$0xff] %vm22_vm0, %v241_v36 }
  0xc4   :  { %261 = vst.msk [vmem:[#allocation2 + $0x188] sm:$0xff] %vm22_vm0, %v242_v38 }
  0xc5   :  { %262 = vst.msk [vmem:[#allocation2 + $0x190] sm:$0x3f] %vm127_vm1, %v243_v40 }
  0xc6   :  { %263 = vst.msk [vmem:[#allocation2 + $0x198] sm:$0xff] %vm22_vm0, %v244_v41 }
  0xc7   :  { %264 = vst.msk [vmem:[#allocation2 + $0x1a0] sm:$0xff] %vm22_vm0, %v245_v43 }
  0xc8   :  { %265 = vst.msk [vmem:[#allocation2 + $0x1a8] sm:$0x3f] %vm127_vm1, %v246_v45 }
  0xc9   :  { %266 = vst.msk [vmem:[#allocation2 + $0x1b0] sm:$0xff] %vm22_vm0, %v247_v46 }
  0xca   :  { %267 = vst.msk [vmem:[#allocation2 + $0x1b8] sm:$0xff] %vm22_vm0, %v248_v48 }
  0xcb   :  { %268 = vst.msk [vmem:[#allocation2 + $0x1c0] sm:$0x3f] %vm127_vm1, %v249_v50 }
  0xcc   :  { %269 = vst.msk [vmem:[#allocation2 + $0x1c8] sm:$0xff] %vm22_vm0, %v250_v51 }
  0xcd   :  { %270 = vst.msk [vmem:[#allocation2 + $0x1d0] sm:$0xff] %vm22_vm0, %v251_v52 }
  0xce   :  { %271 = vst.msk [vmem:[#allocation2 + $0x1d8] sm:$0x3f] %vm127_vm1, %v252_v12 }
  0xcf   :  { %272 = vst.msk [vmem:[#allocation2 + $0x1e0] sm:$0xff] %vm22_vm0, %v253_v54 }
  0xd0   :  { %273 = vst.msk [vmem:[#allocation2 + $0x1e8] sm:$0xff] %vm22_vm0, %v254_v55 }
  0xd1   :  { %274 = vst.msk [vmem:[#allocation2 + $0x1f0] sm:$0x3f] %vm127_vm1, %v255_v56 }
  0xd2   :  { %275 = vst.msk [vmem:[#allocation2 + $0x1f8] sm:$0xff] %vm22_vm0, %v256_v57 }
  0xd3   :  { %276 = vst.msk [vmem:[#allocation2 + $0x200] sm:$0xff] %vm22_vm0, %v257_v58 }
  0xd4   :  { %277 = vst.msk [vmem:[#allocation2 + $0x208] sm:$0x3f] %vm127_vm1, %v258_v59 }
  0xd5   :  { %290 = dma.vmem_to_hbm [thread:$0]  %s283_s2, 8448, %s285_s29, [#allocation3], %s342_s30, %s342_s30, %s343_s3  }
  0xd6   :  { %339 = dma.done.wait [#allocation3], 8448  }
  0xd7   :  { %340 = vsyncadd [#allocation3], 4294958848 }
  0xd8   :  { %295 = vsyncpa [#allocation3], 1 }

</bundles_post_ra>
